<compile_context>
chip_gen: v6e
topology: v6e:2x2x1
jax: 0.10.0
libtpu: 0.0.40
codegen_flags: <defaults>
</compile_context>

<pallas_src>
import numpy as np
import jax
import jax.numpy as jnp
from jax.experimental import pallas as pl
from jax.experimental.pallas import tpu as pltpu

# ----------------------------- model constants ------------------------------
NFMS = (100, 100)          # conv output channels
KS = (4, 5)                # conv kernel sizes
_LANE = 128
_SLAB_ROWS_TARGET = 2048   # default TB*L rows per grid step (fits every gen's
                           # default scoped VMEM; raise block_b to push v6e)


def _round_up(x, m):
    return (x + m - 1) // m * m


# --------------------------------- kernel -----------------------------------
def experiment9_kernel(emb_ref, wc_ref, bc_ref, mask_ref, wfc_ref, bfc_ref,
                       out_ref):
    # emb_ref : (TB, L, H)       bf16  TB batch elements of embedded tokens
    # wc_ref  : (KMAX*H, CP)     bf16  fused tap-major conv weight, Cout-padded
    # bc_ref  : (1, CP)          f32   fused conv bias (0 in padded channels)
    # mask_ref: (L, CP)          f32   1.0 where conv window t is valid, else 0
    # wfc_ref : (CP, NCP)        bf16  fc weight, transposed + lane padded
    # bfc_ref : (1, NCP)         f32   fc bias, padded
    # out_ref : (TB, NCP)        f32   lane-dense logits block
    TB, L, H = emb_ref.shape
    KH, CP = wc_ref.shape
    KMAX = KH // H
    n = TB * L

    # Flatten to one (n, H) slab; all taps share it.
    slab_bf = emb_ref[...].reshape(n, H)                       # bf16
    # Roll an f32 copy of the slab (safe lowering on every generation; rolling
    # the bf16 slab directly would halve XLU traffic but bf16 packs two rows
    # per sublane on v5e). bf16 -> f32 -> bf16 round trip is exact.
    slab_f32 = slab_bf.astype(jnp.float32)

    # Tap j contributes slab[i + j] @ W[j] to output row i. Build the lane
    # concat X[:, j*H:(j+1)*H] = roll(slab, -j) and do ONE matmul with the
    # fused (KMAX*H, CP) weight -> contraction depth KMAX*H instead of H.
    taps = [slab_bf]
    for j in range(1, KMAX):                                   # static, KMAX=5
        rolled = pltpu.roll(slab_f32, shift=n - j, axis=0)     # == roll(x, -j)
        taps.append(rolled.astype(jnp.bfloat16))
    x = jnp.concatenate(taps, axis=1)                          # (n, KMAX*H)

    acc = jnp.dot(x, wc_ref[...], preferred_element_type=jnp.float32)
    acc = jnp.maximum(acc + bc_ref[...], 0.0)                  # bias + ReLU

    # Zero rows whose conv window runs past the end of its own sequence (these
    # rows also absorb the roll wrap-around / cross-batch contamination).
    # Valid values are >= 0 after ReLU, so zeroing invalid rows leaves the
    # max-over-time unchanged.  mask is a tiny precomputed (L, CP) {0,1} table.
    acc = acc.reshape(TB, L, CP) * mask_ref[...]

    # Max over time per batch element.
    feat = jnp.max(acc, axis=1)                                # (TB, CP)

    # Dropout(0.1) is identity at inference.  FC on lane-dense padded operands.
    out = jnp.dot(feat.astype(jnp.bfloat16), wfc_ref[...],
                  preferred_element_type=jnp.float32)
    out_ref[...] = out + bfc_ref[...]


# ------------------------------ param packing -------------------------------
def _pack_params(params):
    """Fuse conv1/conv2 into one tap-major lane-padded weight, pad FC, bf16."""
    C1, C2 = NFMS
    K1, K2 = KS
    kmax = max(K1, K2)
    H = params["w1"].shape[1]
    CP = _round_up(C1 + C2, _LANE)                   # 200 -> 256
    NC = params["wfc"].shape[1]
    NCP = _round_up(NC, _LANE)                       # 4   -> 128

    wc = jnp.zeros((kmax, H, CP), jnp.float32)
    wc = wc.at[:K1, :, :C1].set(params["w1"])
    wc = wc.at[:K2, :, C1:C1 + C2].set(params["w2"])
    wc_cat = wc.reshape(kmax * H, CP)                # fused single-matmul form

    bc = jnp.zeros((1, CP), jnp.float32)
    bc = bc.at[:, :C1].set(params["b1"]).at[:, C1:C1 + C2].set(params["b2"])

    wfc = jnp.zeros((CP, NCP), jnp.float32)
    wfc = wfc.at[:C1 + C2, :NC].set(params["wfc"])
    bfc = jnp.zeros((1, NCP), jnp.float32).at[:, :NC].set(params["bfc"])

    # Zero padding guarantees padded channels / padded logit lanes stay 0.
    return wc_cat.astype(jnp.bfloat16), bc, wfc.astype(jnp.bfloat16), bfc


def _build_time_mask(L):
    """(L, CP) {0,1} validity mask: conv-k channels valid for t < L-k+1."""
    C1, C2 = NFMS
    K1, K2 = KS
    CP = _round_up(C1 + C2, _LANE)
    t = np.arange(L)[:, None]
    mask = np.zeros((L, CP), np.float32)
    mask[:, :C1] = (t < L - K1 + 1)
    mask[:, C1:C1 + C2] = (t < L - K2 + 1)
    return jnp.asarray(mask)


# --------------------------------- wrapper ----------------------------------
def experiment9_forward(x_ids, params, *, block_b=None, vmem_limit_bytes=None):
    """x_ids: (B, L) int32 token indices. Returns (B, num_classes) float32."""
    C1, C2 = NFMS
    K1, K2 = KS
    kmax = max(K1, K2)

    # Embedding gather in the wrapper; emit bf16 so the (B, L, H) activation
    # written to / re-read from HBM is half-size.
    # TODO(synk): gather embedding rows inside the kernel (scalar-prefetched
    # ids + batched DMA from an HBM-resident table) to remove this HBM round
    # trip; per-row async copies are too small to win at these H.
    emb = jnp.take(params["embedding"], x_ids, axis=0).astype(jnp.bfloat16)
    B, L, H = emb.shape
    if L < kmax:
        raise ValueError("sequence length must be >= max conv kernel size")
    if L % 8 != 0:
        raise ValueError("sequence length must be a multiple of 8 (pad inputs)")

    wc, bc, wfc, bfc = _pack_params(params)
    mask = _build_time_mask(L)
    NCP = wfc.shape[1]
    NC = params["wfc"].shape[1]

    # ---- batch tile: size TB from a slab-row budget, not a constant --------
    # Live f32 intermediates are a few KiB per slab (TB*L) row, so the default
    # ~2K-row target stays well inside every generation's default scoped VMEM.
    # Pass block_b / vmem_limit_bytes to push harder on v6e (128 MiB physical)
    # or to shrink for very long sequences on v7x (64 MiB physical).
    # TODO(synk): for long L, tile the time axis inside the step (running
    # (TB, CP) max in scratch) so TB can stay large independent of L.
    if block_b is None:
        block_b = max(8, _SLAB_ROWS_TARGET // L)
    if B > 8:
        # keep >= 2 grid steps so both v7x TensorCores get work
        block_b = min(block_b, _round_up((B + 1) // 2, 8))
    tb = max(8, _round_up(min(block_b, B), 8))
    b_pad = _round_up(B, tb)
    if b_pad != B:
        emb = jnp.pad(emb, ((0, b_pad - B), (0, 0), (0, 0)))

    cp_kwargs = dict(dimension_semantics=("parallel",))        # megacore split
    if vmem_limit_bytes is not None:
        cp_kwargs["vmem_limit_bytes"] = vmem_limit_bytes

    # NOTE: the grid-invariant operands (wc/bc/mask/wfc/bfc) are tiny at these
    # sizes; if H grows they could be single-buffered (pipeline_mode) to save
    # VMEM on v7x.
    out = pl.pallas_call(
        experiment9_kernel,
        out_shape=jax.ShapeDtypeStruct((b_pad, NCP), jnp.float32),
        grid_spec=pltpu.PrefetchScalarGridSpec(
            num_scalar_prefetch=0,
            grid=(b_pad // tb,),
            in_specs=[
                pl.BlockSpec((tb, L, H), lambda b: (b, 0, 0)),   # emb block
                pl.BlockSpec(wc.shape, lambda b: (0, 0)),        # fused conv W
                pl.BlockSpec(bc.shape, lambda b: (0, 0)),        # fused conv b
                pl.BlockSpec(mask.shape, lambda b: (0, 0)),      # time mask
                pl.BlockSpec(wfc.shape, lambda b: (0, 0)),       # fc W (padded)
                pl.BlockSpec(bfc.shape, lambda b: (0, 0)),       # fc b (padded)
            ],
            out_specs=pl.BlockSpec((tb, NCP), lambda b: (b, 0)),
        ),
        compiler_params=pltpu.CompilerParams(**cp_kwargs),
    )(emb, wc, bc, mask, wfc, bfc)

    return out[:B, :NC]


# ------------------------------ pure-JAX reference ---------------------------
def reference_forward(x_ids, params):
    """Mirrors the PyTorch module; inputs rounded to bf16 like the kernel."""
    f32 = jnp.float32
    emb = jnp.take(params["embedding"], x_ids, axis=0)
    emb = emb.astype(jnp.bfloat16).astype(f32)
    B, L, H = emb.shape

    def branch(w, b):
        w = w.astype(jnp.bfloat16).astype(f32)
        k = w.shape[0]
        lo = L - k + 1
        acc = jnp.zeros((B, lo, w.shape[2]), f32)
        for j in range(k):
            acc = acc + jnp.einsum("blh,hc->blc", emb[:, j:j + lo, :], w[j],
                                   preferred_element_type=f32)
        acc = jnp.maximum(acc + b[None, :, :], 0.0)
        return jnp.max(acc, axis=1)                              # (B, C)

    m1 = branch(params["w1"], params["b1"])
    m2 = branch(params["w2"], params["b2"])
    feat = jnp.concatenate([m1, m2], axis=1)
    feat = feat.astype(jnp.bfloat16).astype(f32)
    wfc = params["wfc"].astype(jnp.bfloat16).astype(f32)
    return feat @ wfc + params["bfc"]


# --------------------------------- init --------------------------------------
def init_params(key, vocab_size, hidden_dim, num_classes):
    k_emb, k_w1, k_b1, k_w2, k_b2, k_wf, k_bf = jax.random.split(key, 7)
    C1, C2 = NFMS
    K1, K2 = KS
    # PyTorch Conv1d weight is (Cout, Cin, K); stored here tap-major as
    # (K, Cin, Cout) so each tap is a ready-to-use (H, Cout) matmul operand.
    return {
        "embedding": jax.random.normal(k_emb, (vocab_size, hidden_dim),
                                       jnp.float32),
        "w1": 0.1 * jax.random.normal(k_w1, (K1, hidden_dim, C1), jnp.float32),
        "b1": 0.1 * jax.random.normal(k_b1, (1, C1), jnp.float32),
        "w2": 0.1 * jax.random.normal(k_w2, (K2, hidden_dim, C2), jnp.float32),
        "b2": 0.1 * jax.random.normal(k_b2, (1, C2), jnp.float32),
        # nn.Linear weight is (NC, C1+C2); stored transposed.
        "wfc": 0.1 * jax.random.normal(k_wf, (C1 + C2, num_classes),
                                       jnp.float32),
        "bfc": 0.1 * jax.random.normal(k_bf, (1, num_classes), jnp.float32),
    }


if __name__ == "__main__":
    key = jax.random.PRNGKey(0)
    vocab_size, hidden_dim, num_classes = 50, 32, 4
    B, L = 16, 16                      # 2 grid steps -> both v7x cores busy

    k_params, k_ids = jax.random.split(key)
    params = init_params(k_params, vocab_size, hidden_dim, num_classes)
    x_ids = jax.random.randint(k_ids, (B, L), 0, vocab_size, dtype=jnp.int32)

    out = jax.block_until_ready(experiment9_forward(x_ids, params))
    ref = jax.block_until_ready(reference_forward(x_ids, params))
    np.testing.assert_allclose(np.asarray(out), np.asarray(ref),
                               rtol=2e-2, atol=2e-2)
    print("KERNEL_OK")
</pallas_src>

<mosaic_0001>
module attributes {stable_mosaic.version = 11 : i64} {
  func.func @experiment9_kernel(%arg0: i32, %arg1: memref<8x16x32xbf16, #tpu.memory_space<vmem>>, %arg2: memref<160x256xbf16, #tpu.memory_space<vmem>>, %arg3: memref<1x256xf32, #tpu.memory_space<vmem>>, %arg4: memref<16x256xf32, #tpu.memory_space<vmem>>, %arg5: memref<256x128xbf16, #tpu.memory_space<vmem>>, %arg6: memref<1x128xf32, #tpu.memory_space<vmem>>, %arg7: memref<8x128xf32, #tpu.memory_space<vmem>>) attributes {dimension_semantics = [#tpu.dimension_semantics<parallel>], iteration_bounds = array<i64: 2>, scalar_prefetch = 0 : i64, scratch_operands = 0 : i64, tpu.core_type = #tpu.core_type<tc>, window_params = [{transform_indices = @transform_0, window_bounds = array<i64: 8, 16, 32>}, {pipeline_mode = #tpu.pipeline_mode<synchronous>, transform_indices = @transform_1, window_bounds = array<i64: 160, 256>}, {pipeline_mode = #tpu.pipeline_mode<synchronous>, transform_indices = @transform_2, window_bounds = array<i64: 1, 256>}, {pipeline_mode = #tpu.pipeline_mode<synchronous>, transform_indices = @transform_3, window_bounds = array<i64: 16, 256>}, {pipeline_mode = #tpu.pipeline_mode<synchronous>, transform_indices = @transform_4, window_bounds = array<i64: 256, 128>}, {pipeline_mode = #tpu.pipeline_mode<synchronous>, transform_indices = @transform_5, window_bounds = array<i64: 1, 128>}, {transform_indices = @transform_6, window_bounds = array<i64: 8, 128>}]} {
    %c0 = arith.constant 0 : index
    %c0_0 = arith.constant 0 : index
    %c0_1 = arith.constant 0 : index
    %0 = vector.load %arg1[%c0, %c0_0, %c0_1] : memref<8x16x32xbf16, #tpu.memory_space<vmem>>, vector<8x16x32xbf16>
    %1 = vector.shape_cast %0 : vector<8x16x32xbf16> to vector<128x32xbf16>
    %2 = arith.extf %1 : vector<128x32xbf16> to vector<128x32xf32>
    %c127_i32 = arith.constant 127 : i32
    %3 = tpu.dynamic_rotate %2 by %c127_i32 dim 0 : vector<128x32xf32>, i32 -> vector<128x32xf32>
    %4 = arith.truncf %3 : vector<128x32xf32> to vector<128x32xbf16>
    %c126_i32 = arith.constant 126 : i32
    %5 = tpu.dynamic_rotate %2 by %c126_i32 dim 0 : vector<128x32xf32>, i32 -> vector<128x32xf32>
    %6 = arith.truncf %5 : vector<128x32xf32> to vector<128x32xbf16>
    %c125_i32 = arith.constant 125 : i32
    %7 = tpu.dynamic_rotate %2 by %c125_i32 dim 0 : vector<128x32xf32>, i32 -> vector<128x32xf32>
    %8 = arith.truncf %7 : vector<128x32xf32> to vector<128x32xbf16>
    %c124_i32 = arith.constant 124 : i32
    %9 = tpu.dynamic_rotate %2 by %c124_i32 dim 0 : vector<128x32xf32>, i32 -> vector<128x32xf32>
    %10 = arith.truncf %9 : vector<128x32xf32> to vector<128x32xbf16>
    %11 = tpu.concatenate %1, %4, %6, %8, %10 in 1 : vector<128x32xbf16>, vector<128x32xbf16>, vector<128x32xbf16>, vector<128x32xbf16>, vector<128x32xbf16> -> vector<128x160xbf16>
    %c0_2 = arith.constant 0 : index
    %c0_3 = arith.constant 0 : index
    %12 = vector.load %arg2[%c0_2, %c0_3] : memref<160x256xbf16, #tpu.memory_space<vmem>>, vector<160x256xbf16>
    %cst = arith.constant dense<0.000000e+00> : vector<128x256xf32>
    %13 = tpu.matmul %11, %12, %cst {dimension_numbers = #tpu.dot_dimension_numbers<[1], [0], [0], [1], [0, 0, 1, 1], [], []>} : vector<128x160xbf16>, vector<160x256xbf16>, vector<128x256xf32> -> vector<128x256xf32>
    %c0_4 = arith.constant 0 : index
    %c0_5 = arith.constant 0 : index
    %14 = vector.load %arg3[%c0_4, %c0_5] : memref<1x256xf32, #tpu.memory_space<vmem>>, vector<1x256xf32>
    %15 = vector.broadcast %14 : vector<1x256xf32> to vector<128x256xf32>
    %16 = arith.addf %13, %15 : vector<128x256xf32>
    %cst_6 = arith.constant 0.000000e+00 : f32
    %17 = vector.broadcast %cst_6 : f32 to vector<128x256xf32>
    %18 = arith.maximumf %16, %17 : vector<128x256xf32>
    %19 = vector.shape_cast %18 : vector<128x256xf32> to vector<8x16x256xf32>
    %c0_7 = arith.constant 0 : index
    %c0_8 = arith.constant 0 : index
    %20 = vector.load %arg4[%c0_7, %c0_8] : memref<16x256xf32, #tpu.memory_space<vmem>>, vector<16x256xf32>
    %21 = vector.shape_cast %20 : vector<16x256xf32> to vector<1x16x256xf32>
    %22 = vector.broadcast %21 : vector<1x16x256xf32> to vector<8x16x256xf32>
    %23 = arith.mulf %19, %22 : vector<8x16x256xf32>
    %cst_9 = arith.constant dense<0xFF800000> : vector<8x256xf32>
    %24 = vector.multi_reduction <maximumf>, %23, %cst_9 [1] : vector<8x16x256xf32> to vector<8x256xf32>
    %25 = arith.truncf %24 : vector<8x256xf32> to vector<8x256xbf16>
    %c0_10 = arith.constant 0 : index
    %c0_11 = arith.constant 0 : index
    %26 = vector.load %arg5[%c0_10, %c0_11] : memref<256x128xbf16, #tpu.memory_space<vmem>>, vector<256x128xbf16>
    %cst_12 = arith.constant dense<0.000000e+00> : vector<8x128xf32>
    %27 = tpu.matmul %25, %26, %cst_12 {dimension_numbers = #tpu.dot_dimension_numbers<[1], [0], [0], [1], [0, 0, 1, 1], [], []>} : vector<8x256xbf16>, vector<256x128xbf16>, vector<8x128xf32> -> vector<8x128xf32>
    %c0_13 = arith.constant 0 : index
    %c0_14 = arith.constant 0 : index
    %28 = vector.load %arg6[%c0_13, %c0_14] : memref<1x128xf32, #tpu.memory_space<vmem>>, vector<1x128xf32>
    %29 = vector.broadcast %28 : vector<1x128xf32> to vector<8x128xf32>
    %30 = arith.addf %27, %29 : vector<8x128xf32>
    %c0_15 = arith.constant 0 : index
    %c0_16 = arith.constant 0 : index
    %31 = vector.load %arg7[%c0_15, %c0_16] : memref<8x128xf32, #tpu.memory_space<vmem>>, vector<8x128xf32>
    tpu.vector_store %arg7[%c0_15, %c0_16], %30 {strides = array<i32>} : memref<8x128xf32, #tpu.memory_space<vmem>>, vector<8x128xf32>,
    return
  }
  func.func @transform_0(%arg0: i32) -> (i32, i32, i32) {
    %c0_i32 = arith.constant 0 : i32
    %c0_i32_0 = arith.constant 0 : i32
    %c0_i32_1 = arith.constant 0 : i32
    return %arg0, %c0_i32, %c0_i32_0 : i32, i32, i32
  }
  func.func @transform_1(%arg0: i32) -> (i32, i32) {
    %c0_i32 = arith.constant 0 : i32
    %c0_i32_0 = arith.constant 0 : i32
    %c0_i32_1 = arith.constant 0 : i32
    return %c0_i32, %c0_i32_0 : i32, i32
  }
  func.func @transform_2(%arg0: i32) -> (i32, i32) {
    %c0_i32 = arith.constant 0 : i32
    %c0_i32_0 = arith.constant 0 : i32
    %c0_i32_1 = arith.constant 0 : i32
    return %c0_i32, %c0_i32_0 : i32, i32
  }
  func.func @transform_3(%arg0: i32) -> (i32, i32) {
    %c0_i32 = arith.constant 0 : i32
    %c0_i32_0 = arith.constant 0 : i32
    %c0_i32_1 = arith.constant 0 : i32
    return %c0_i32, %c0_i32_0 : i32, i32
  }
  func.func @transform_4(%arg0: i32) -> (i32, i32) {
    %c0_i32 = arith.constant 0 : i32
    %c0_i32_0 = arith.constant 0 : i32
    %c0_i32_1 = arith.constant 0 : i32
    return %c0_i32, %c0_i32_0 : i32, i32
  }
  func.func @transform_5(%arg0: i32) -> (i32, i32) {
    %c0_i32 = arith.constant 0 : i32
    %c0_i32_0 = arith.constant 0 : i32
    %c0_i32_1 = arith.constant 0 : i32
    return %c0_i32, %c0_i32_0 : i32, i32
  }
  func.func @transform_6(%arg0: i32) -> (i32, i32) {
    %c0_i32 = arith.constant 0 : i32
    %c0_i32_0 = arith.constant 0 : i32
    return %arg0, %c0_i32 : i32, i32
  }
}

</mosaic_0001>

<bundles_post_ra>
// kernel: tpu_custom_call.1
= control target key start
LH: loop header
LB: loop body
LE: loop exit
PB: predicated region body
PF: predicated region fallthrough
CT: control target
= control target key end

     0   :  { %11 = vsyncpa [#allocation3], 0  ;;  %s2705_s0 = inlined_call_operand.hbm [shape: bf16[16,16,32], index: 0, kind: input, shape index: {}]   ;;  %s2706_s1 = inlined_call_operand.hbm [shape: bf16[160,256], index: 1, kind: input, shape index: {}]   ;;  %s2707_s2 = inlined_call_operand.vmem [shape: f32[1,256], index: 2, kind: input, shape index: {}]   ;;  %s2708_s3 = inlined_call_operand.hbm [shape: f32[16,256], index: 3, kind: input, shape index: {}]   ;;  %s2709_s4 = inlined_call_operand.hbm [shape: bf16[256,128], index: 4, kind: input, shape index: {}]   ;;  %s2710_s5 = inlined_call_operand.vmem [shape: f32[1,128], index: 5, kind: input, shape index: {}]   ;;  %s2711_s6 = inlined_call_operand.hbm [shape: f32[16,128], index: 6, kind: output, shape index: {}]  }
   0x1   :  { %13 = vsyncpa [#allocation3 + $0x1], 0 }
   0x2   :  { %14 = vsyncpa [#allocation6], 0 }
   0x3   :  { %15 = vsyncpa [#allocation9], 0 }
   0x4   :  { %16 = vsyncpa [#allocation4], 0 }
   0x5   :  { %18 = vsyncpa [#allocation4 + $0x1], 0  ;;  %s1979_s21 = smov 0   ;;  %s1981_s22 = smov 0  }
   0x6   :  { %s1983_s23 = smov 0   ;;  %s1985_s24 = smov 0  }
   0x7 LB: > { %s2000_s25 = sadd.s32 4294967295, %s1928_s24   ;;  %s1505_s26 = sadd.s32 4294967294, %s1928_s24   ;;  %s1928_s24 = sphi %s1985_s24, %s2739_s24   ;;  %s1924_s23 = sphi %s1983_s23, %s2738_s23   ;;  %s1920_s22 = sphi %s1981_s22, %s2737_s22   ;;  %s1916_s21 = sphi %s1979_s21, %s2736_s21  }
   0x8   : > { %p44_p0 = scmp.ne.s32.totalorder %s1920_s22, %s1916_s21  ;;  %p2712_p1 = scmp.eq.s32.totalorder %s2000_s25, 0 }
   0x9   : > { %p179_p3 = scmp.eq.s32.totalorder %s1505_s26, 1  ;;  %p1506_p5 = scmp.ge.s32.totalorder %s1928_s24, 1 }
   0xa   : > { %p2009_p4 = por %p2712_p1, %p44_p0  ;;  %p186_p7 = scmp.lt.s32.totalorder %s1928_s24, 3 }
   0xb   : > { %p2014_p6 = por %p179_p3, %p44_p0  ;;  %s1930_s30 = smov [#allocation5]  }
   0xc   : > { %s2718_s27 = scalar_select %p2009_p4, 1, 0 }
   0xd   : > { %s2719_s28 = scalar_select %p2014_p6, 1, 0 }
   0xe   : > { %p2019_p8 = pnand %p1506_p5, %p186_p7  ;;  %s198_s7 = sshll.u32 %s1930_s30, 4  ;;  %s199_s7 = int_to_ptr.vmem [resolvable:$true] %s198_s7 }
   0xf   : > { %s1931_s9 = smov [#allocation7]   ;;  %s1761_s11 = scalar_lea.vmem %s199_s7, 2560 }
  0x10   : > { %s2720_s29 = scalar_select %p2019_p8, 1, 0 }
  0x11   : > { %p1618_p9 = pneg %p2019_p8  ;;  %s214_s10 = sshll.u32 %s1931_s9, 4  ;;  %s215_s10 = int_to_ptr.vmem [resolvable:$true] %s214_s10 }
  0x12   : > { %p1762_p13 = scmp.ne.s32.totalorder %s199_s7, %s1761_s11  ;;  %p1769_p5 = scmp.lt.s32.totalorder %s199_s7, %s199_s7 }
  0x13   : > { %p2028_p11 = pnand %p1618_p9, %p2712_p1  ;;  %p1770_p7 = scmp.lt.s32.totalorder %s1761_s11, %s1761_s11 }
  0x15   : > { %p1752_p12 = pneg %p2028_p11  ;;  %p1771_p10 = por %p1770_p7, %p1769_p5 }
  0x17   : > { %p1764_p0 = pnand %p1762_p13, %p1752_p12 }
  0x19   : > { %p1765_p3 = pneg %p1764_p0 }
  0x1b   : > { %p1772_p9 = pnand %p1771_p10, %p1765_p3 }
  0x1d   : > { %1775 = shalt.err (!%p1772_p9)
}
  0x1e   : > { %s1932_s12 = smov 128   ;;  %s1933_s13 = smov 8  }
  0x1f   : > { %1621 = dma.hbm_to_vmem [thread:$0]  (!%p2028_p11), %s2706_s1, 2560, %s199_s7, [#allocation6], %s1932_s12, %s1932_s12, %s1933_s13  }
  0x20   : > { %s1787_s16 = scalar_lea.vmem %s215_s10, 512  ;;  %p1795_p2 = scmp.lt.s32.totalorder %s215_s10, %s215_s10 }
  0x21   : > { %p1788_p1 = scmp.ne.s32.totalorder %s215_s10, %s1787_s16  ;;  %p1796_p6 = scmp.lt.s32.totalorder %s1787_s16, %s1787_s16 }
  0x23   : > { %p1790_p13 = pnand %p1788_p1, %p1752_p12  ;;  %p1797_p5 = por %p1796_p6, %p1795_p2 }
  0x25   : > { %p1791_p0 = pneg %p1790_p13 }
  0x27   : > { %p1798_p10 = pnand %p1797_p5, %p1791_p0 }
  0x29   : > { %1801 = shalt.err (!%p1798_p10)
}
  0x2a   : > { %s1934_s17 = smov 256   ;;  %s1935_s18 = smov 16  }
  0x2b   : > { %1624 = dma.hbm_to_vmem [thread:$0]  (!%p2028_p11), %s2708_s3, 512, %s215_s10, [#allocation6], %s1934_s17, %s1934_s17, %s1935_s18  }
  0x2c   : > { %s1936_s26 = smov [#allocation8]  }
  0x2d   : > { %s227_s30 = sshll.u32 %s1936_s26, 4  ;;  %s228_s30 = int_to_ptr.vmem [resolvable:$true] %s227_s30 }
  0x2e   : > { %s1813_s7 = scalar_lea.vmem %s228_s30, 2048  ;;  %p1821_p6 = scmp.lt.s32.totalorder %s228_s30, %s228_s30 }
  0x2f   : > { %p1814_p1 = scmp.ne.s32.totalorder %s228_s30, %s1813_s7  ;;  %p1822_p7 = scmp.lt.s32.totalorder %s1813_s7, %s1813_s7 }
  0x31   : > { %p1816_p3 = pnand %p1814_p1, %p1752_p12  ;;  %p1823_p9 = por %p1822_p7, %p1821_p6 }
  0x33   : > { %p1817_p2 = pneg %p1816_p3 }
  0x35   : > { %p1824_p13 = pnand %p1823_p9, %p1817_p2 }
  0x37   : > { %1827 = shalt.err (!%p1824_p13)
}
  0x38   : > { %s2713_s9 = smov 64   ;;  %s2714_s10 = smov 4  }
  0x39   : > { %1627 = dma.hbm_to_vmem [thread:$0]  (!%p2028_p11), %s2709_s4, 2048, %s228_s30, [#allocation9], %s2713_s9, %s2713_s9, %s2714_s10  }
  0x3a   : > { %s2062_s13 = sadd.s32 1, %s1928_s24   ;;  %s31_s15 = sadd.s32 1, %s1924_s23 }
  0x3b   : > { %s28_s14 = ssub.s32 %s1928_s24, %s2062_s13  ;;  %p38_p0 = scmp.ne.s32.totalorder %s1924_s23, %s1920_s22 }
  0x3c   : > { %p29_p12 = scmp.eq.s32.totalorder %s28_s14, 0  ;;  %p39_p5 = scmp.eq.s32.totalorder %s1928_s24, 0 }
  0x3d   : > { %p1639_p10 = scmp.lt.s32.totalorder %s1928_s24, 2  ;;  %p2722_p3 = scmp.eq.s32.totalorder %s2000_s25, 1 }
  0x3e   : > { %s2072_s16 = scalar_select %p29_p12, %s1924_s23, %s31_s15  }
  0x3f   : > { %p40_p1 = por %p39_p5, %p38_p0  ;;  %p2076_p2 = por %p2722_p3, %p38_p0 }
  0x40   : > { %s244_s17 = sand.u32 1, %s1924_s23   ;;  %s1579_s18 = sshll.u32 %s1928_s24, 10 }
  0x41   : > { %s2723_s8 = scalar_select %p2076_p2, 1, 0 }
  0x42   : > { %s1511_s19 = sshll.u32 %s244_s17, 6  ;;  %s2085_s30 = scalar_lea.hbm %s2705_s0, %s1579_s18 }
  0x43   : > { %s248_s7 = scalar_lea.vmem [#allocation2], %s1511_s19  ;;  %p2087_p11 = pnand %p1639_p10, %p40_p1 }
  0x44   : > { %s256_s11 = sshll.u32 %s248_s7, 4  ;;  %s2093_s14 = scalar_lea.sflag [#allocation3], %s244_s17  ;;  %s2091_s11 = int_to_ptr.vmem [resolvable:$true] %s256_s11 }
  0x45   : > { %s1828_s15 = scalar_lea.hbm %s2085_s30, 1024  ;;  %p1830_p7 = pneg %p2087_p11 }
  0x46   : > { %p1829_p6 = scmp.ne.s32.totalorder %s2085_s30, %s1828_s15  ;;  %s1833_s19 = scalar_lea.hbm %s2705_s0, 2048 }
  0x47   : > { %p1834_p12 = scmp.lt.s32.totalorder %s2085_s30, %s2705_s0  ;;  %p1835_p0 = scmp.lt.s32.totalorder %s1833_s19, %s1828_s15 }
  0x48   : > { %p1831_p9 = pnand %p1830_p7, %p1829_p6 }
  0x49   : > { %p1836_p5 = por %p1835_p0, %p1834_p12 }
  0x4a   : > { %p1832_p13 = pneg %p1831_p9 }
  0x4c   : > { %p1837_p10 = pnand %p1836_p5, %p1832_p13 }
  0x4e   : > { %1840 = shalt.err (!%p1837_p10)
}
  0x4f   : > { %s1841_s17 = scalar_lea.vmem %s2091_s11, 1024  ;;  %s1939_s9 = smov [#allocation2]  }
  0x50   : > { %p1842_p1 = scmp.ne.s32.totalorder %s2091_s11, %s1841_s17  ;;  %s1846_s10 = sshll.u32 %s1939_s9, 4  ;;  %s1847_s10 = int_to_ptr.vmem [resolvable:$false] %s1846_s10 }
  0x51   : > { %s1848_s18 = scalar_lea.vmem %s1847_s10, 2048  ;;  %p1849_p9 = scmp.lt.s32.totalorder %s2091_s11, %s1847_s10 }
  0x52   : > { %p1844_p3 = pnand %p1842_p1, %p1830_p7  ;;  %p1850_p2 = scmp.lt.s32.totalorder %s1848_s18, %s1841_s17 }
  0x54   : > { %p1845_p6 = pneg %p1844_p3  ;;  %p1851_p4 = por %p1850_p2, %p1849_p9 }
  0x56   : > { %p1852_p8 = pnand %p1851_p4, %p1845_p6 }
  0x58   : > { %1855 = shalt.err (!%p1852_p8)
}
  0x59   : > { %s2725_s15 = smov 4   ;;  %s2726_s20 = smov 64  }
  0x5a   : > { %1631 = dma.hbm_to_vmem [thread:$0]  (!%p2087_p11), %s2085_s30, 1024, %s2091_s11, %s2093_s14, %s2726_s20, %s2726_s20, %s2725_s15  }
  0x5b   : > { %p2727_p7 = scmp.ne.s32.totalorder %s2720_s29, 0 }
  0x5c   : > { %s2120_s9 = sand.u32 (!%p2727_p7), 1, %s1920_s22   ;;  %p2728_p4 = scmp.ne.s32.totalorder (!%p2727_p7), %s2718_s27, 0 }
  0x5d   : > { %268 = sbr.rel (%p2727_p7) target bundleno = 731 (0x2db), region = 44  ;;  %s1516_s10 = sshll.u32 (!%p2727_p7), %s2120_s9, 6 }
  0x5e   : > { %s271_s19 = scalar_lea.sflag (!%p2727_p7), [#allocation3], %s2120_s9  ;;  %s2124_s26 = scalar_lea.vmem (!%p2727_p7), [#allocation2], %s1516_s10 }
  0x62   : > { %1899 = dma.done.wait (%p2728_p4), %s271_s19, 1024  }
  0x63   : > { %1901 = vsyncadd (%p2728_p4), %s271_s19, 4294966272  ;;  %p2729_p8 = scmp.eq.s32.totalorder %s2000_s25, 0 }
  0x65   : > { %1903 = dma.done.wait (%p2729_p8), [#allocation6], 3072   ;;  %p2730_p2 = pmov %p2729_p8 }
  0x67   : > { %1905 = vsyncadd (%p2730_p2), [#allocation6], 4294964224  ;;  %p2731_p11 = pmov %p2730_p2 }
  0x68   : > { %p2732_p13 = pmov %p2730_p2 }
  0x69   : > { %1907 = dma.done.wait (%p2731_p11), [#allocation9], 2048  }
  0x6a   : > { %1909 = vsyncadd (%p2732_p13), [#allocation9], 4294965248  ;;  %v365_v0 = vlaneseq  ;;  %v2141_v2 = vld [vmem:[%s2124_s26] sm:$0xff]   ;;  %v2144_v3 = vld [vmem:[%s2124_s26 + $0x8] sm:$0xff]   ;;  %s1940_s27 = smov 32   ;;  %s1941_s29 = smov 96  }
  0x6b   : > { %v2150_v4 = vld [vmem:[%s2124_s26 + $0x10] sm:$0xff]   ;;  %v2153_v5 = vunpack.c.l.bf16 %v2141_v2  ;;  %v2156_v6 = vunpack.c.h.bf16 %v2141_v2  ;;  %v2159_v7 = vunpack.c.l.bf16 %v2144_v3  ;;  %v2162_v8 = vunpack.c.h.bf16 %v2144_v3  ;;  %v2165_v9 = vld [vmem:[%s2124_s26 + $0x18] sm:$0xff]   ;;  %v1691_v32 = vld [vmem:[#allocation5 + $0x64] ss:$8 sps:$4 sm:$0xff]   ;;  %s1942_s30 = smov 64   ;;  %s1520_s14 = sshll.u32 %s2120_s9, 3 }
  0x6c   : > { %v2138_v1 = vshrl.u32 %v365_v0, 7  ;;  %v2168_v10 = vunpack.c.l.bf16 %v2150_v4  ;;  %v2171_v11 = vunpack.c.h.bf16 %v2150_v4  ;;  %v2174_v12 = vunpack.c.l.bf16 %v2165_v9  ;;  %v1688_v22 = vld [vmem:[#allocation5 + $0x74] ss:$8 sps:$4 sm:$0xff]   ;;  %v1690_v27 = vld [vmem:[#allocation5 + $0x70] ss:$8 sps:$4 sm:$0xff]   ;;  %v2227_v51 = vld [vmem:[%s2124_s26 + $0x20] sm:$0xff]  }
  0x6d   : > { %v2177_v13 = vunpack.c.h.bf16 %v2165_v9  ;;  %v349_v14 = vrot.slane %v2153_v5, 1  ;;  %v350_v15 = vrot.slane %v2156_v6, 1  ;;  %v351_v16 = vrot.slane %v2159_v7, 1  ;;  %850 = vmatprep.subr.bf16.mxu0 %v1688_v22  ;;  %v1693_v37 = vld [vmem:[#allocation5 + $0x60] ss:$8 sps:$4 sm:$0xff]   ;;  %s1575_s18 = sshll.u32 %s2000_s25, 7 }
  0x6e   : > { %vm367_vm0 = vcmp.lt.s32.totalorder %v2138_v1, 7  ;;  %vm449_vm1 = vcmp.lt.s32.totalorder %v2138_v1, 5  ;;  %vm408_vm2 = vcmp.lt.s32.totalorder %v2138_v1, 6  ;;  %v433_v17 = vrot.slane %v2153_v5, 3  ;;  %851 = vmatpush1.bf16.msra.mxu0 %v1690_v27  ;;  %v1694_v42 = vld [vmem:[#allocation5 + $0x54] ss:$8 sps:$4 sm:$0xff]  }
  0x6f   : > { %v434_v18 = vrot.slane %v2156_v6, 3  ;;  %v435_v19 = vrot.slane %v2159_v7, 3  ;;  %v392_v20 = vrot.slane %v2153_v5, 2  ;;  %v393_v21 = vrot.slane %v2156_v6, 2  ;;  %852 = vmatprep.subr.bf16.mxu0 %v1691_v32  ;;  %v1696_v54 = vld [vmem:[#allocation5 + $0x50] ss:$8 sps:$4 sm:$0xff]  }
  0x70   : > { %v381_v23 = vsel %vm367_vm0, %v350_v15, %v351_v16  ;;  %v382_v24 = vsel %vm367_vm0, %v349_v14, %v350_v15  ;;  %v394_v25 = vrot.slane %v2159_v7, 2  ;;  %v352_v26 = vrot.slane %v2162_v8, 1  ;;  %v1697_v59 = vld [vmem:[#allocation5 + $0x44] ss:$8 sps:$4 sm:$0xff]   ;;  %v2267_v32 = vld [vmem:[%s2124_s26 + $0x30] sm:$0xff]   ;;  %s314_s15 = scalar_lea.vmem [#allocation10], %s1520_s14 }
  0x71   : > { %v384_v28 = vpack.c.bf16 %v381_v23, %v382_v24  ;;  %v463_v29 = vsel %vm449_vm1, %v434_v18, %v435_v19  ;;  %v464_v30 = vsel %vm449_vm1, %v433_v17, %v434_v18  ;;  %v423_v31 = vsel %vm408_vm2, %v392_v20, %v393_v21  ;;  %v2250_v18 = vld [vmem:[%s2124_s26 + $0x28] sm:$0xff]   ;;  %s1406_s20 = sshll.u32 %s314_s15, 4  ;;  %p2733_p0 = scmp.ne.s32.totalorder %s2723_s8, 0  ;;  %s1407_s20 = int_to_ptr.vmem [resolvable:$true] %s1406_s20 }
  0x72   : > { %v466_v33 = vpack.c.bf16 %v463_v29, %v464_v30  ;;  %v422_v34 = vsel %vm408_vm2, %v393_v21, %v394_v25  ;;  %v353_v35 = vrot.slane %v2168_v10, 1  ;;  %v380_v36 = vsel %vm367_vm0, %v351_v16, %v352_v26  ;;  %853 = vmatpush1.bf16.msra.mxu0 %v1693_v37  ;;  %v1699_v23 = vld [vmem:[#allocation5 + $0x40] ss:$8 sps:$4 sm:$0xff]   ;;  %s1943_s25 = smov [#allocation10]  }
  0x73   : > { %563 = vrot.lane.b32.xlu0 %v384_v28, %s1940_s27  ;;  %v425_v38 = vpack.c.bf16 %v422_v34, %v423_v31  ;;  %v395_v39 = vrot.slane %v2162_v8, 2  ;;  %v396_v40 = vrot.slane %v2168_v10, 2  ;;  %v436_v41 = vrot.slane %v2162_v8, 3  ;;  %854 = vmatprep.subr.bf16.mxu0 %v1694_v42  ;;  %v1700_v28 = vld [vmem:[#allocation5 + $0x34] ss:$8 sps:$4 sm:$0xff]  }
  0x74   : > { %611 = vrot.lane.b32.xlu1 %v466_v33, %s1941_s29  ;;  %v379_v43 = vsel %vm367_vm0, %v352_v26, %v353_v35  ;;  %v437_v44 = vrot.slane %v2168_v10, 3  ;;  %v354_v45 = vrot.slane %v2171_v11, 1  ;;  %v355_v46 = vrot.slane %v2174_v12, 1 }
  0x75   : > { %v385_v47 = vpack.c.bf16 %v379_v43, %v380_v36  ;;  %v420_v48 = vsel %vm408_vm2, %v395_v39, %v396_v40  ;;  %v421_v49 = vsel %vm408_vm2, %v394_v25, %v395_v39  ;;  %v462_v50 = vsel %vm449_vm1, %v435_v19, %v436_v41 }
  0x76   : > { %v426_v52 = vpack.c.bf16 %v420_v48, %v421_v49  ;;  %v461_v53 = vsel %vm449_vm1, %v436_v41, %v437_v44  ;;  %v377_v55 = vsel %vm367_vm0, %v354_v45, %v355_v46  ;;  %v378_v56 = vsel %vm367_vm0, %v353_v35, %v354_v45  ;;  %855 = vmatpush1.bf16.msra.mxu0 %v1696_v54  ;;  %v1703_v45 = vld [vmem:[#allocation5 + $0x24] ss:$8 sps:$4 sm:$0xff]  }
  0x77   : > { %587 = vrot.lane.b32.xlu0 %v425_v38, %s1942_s30  ;;  %v397_v57 = vrot.slane %v2171_v11, 2  ;;  %v398_v58 = vrot.slane %v2174_v12, 2  ;;  %v467_v60 = vpack.c.bf16 %v461_v53, %v462_v50  ;;  %v438_v61 = vrot.slane %v2171_v11, 3  ;;  %856 = vmatprep.subr.bf16.mxu0 %v1697_v59  ;;  %v2297_v50 = vld [vmem:[%s2124_s26 + $0x38] sm:$0xff]   ;;  %s2668_s26 = scalar_lea.hbm %s2711_s6, %s1575_s18 }
  0x78   : > { %565 = vrot.lane.b32.xlu1 %v385_v47, %s1940_s27  ;;  %v439_v62 = vrot.slane %v2174_v12, 3  ;;  %v2242_v63 = vunpack.c.l.bf16 %v2227_v51  ;;  %v356_v16 = vrot.slane %v2177_v13, 1  ;;  %v399_v21 = vrot.slane %v2177_v13, 2 }
  0x79   : > { %v418_v0 = vsel %vm408_vm2, %v397_v57, %v398_v58  ;;  %v419_v15 = vsel %vm408_vm2, %v396_v40, %v397_v57  ;;  %v440_v22 = vrot.slane %v2177_v13, 3  ;;  %v386_v24 = vpack.c.bf16 %v377_v55, %v378_v56  ;;  %v1702_v40 = vld [vmem:[#allocation5 + $0x30] ss:$8 sps:$4 sm:$0xff]   ;;  %v1706_v55 = vld [vmem:[#allocation5 + $0x14] ss:$8 sps:$4 sm:$0xff]  }
  0x7a   : > { %v357_v19 = vrot.slane %v2242_v63, 1  ;;  %v459_v25 = vsel %vm449_vm1, %v438_v61, %v439_v62  ;;  %v460_v26 = vsel %vm449_vm1, %v437_v44, %v438_v61  ;;  %v400_v27 = vrot.slane %v2242_v63, 2  ;;  %857 = vmatpush1.bf16.msra.mxu0 %v1699_v23 }
  0x7b   : > { %589 = vrot.lane.b32.xlu0 %v426_v52, %s1942_s30  ;;  %v427_v29 = vpack.c.bf16 %v418_v0, %v419_v15  ;;  %v441_v30 = vrot.slane %v2242_v63, 3  ;;  %v2264_v31 = vunpack.c.h.bf16 %v2227_v51  ;;  %v376_v34 = vsel %vm367_vm0, %v355_v46, %v356_v16  ;;  %858 = vmatprep.subr.bf16.mxu0 %v1700_v28  ;;  %v1705_v52 = vld [vmem:[#allocation5 + $0x20] ss:$8 sps:$4 sm:$0xff]  }
  0x7c   : > { %613 = vrot.lane.b32.xlu1 %v467_v60, %s1941_s29  ;;  %v375_v33 = vsel %vm367_vm0, %v356_v16, %v357_v19  ;;  %v2274_v35 = vunpack.c.l.bf16 %v2250_v18  ;;  %v468_v36 = vpack.c.bf16 %v459_v25, %v460_v26  ;;  %v417_v37 = vsel %vm408_vm2, %v398_v58, %v399_v21 }
  0x7d   : > { %v458_v38 = vsel %vm449_vm1, %v439_v62, %v440_v22  ;;  %v2281_v39 = vunpack.c.h.bf16 %v2250_v18  ;;  %v416_v41 = vsel %vm408_vm2, %v399_v21, %v400_v27  ;;  %v457_v42 = vsel %vm449_vm1, %v440_v22, %v441_v30 }
  0x7e   : > { %v358_v43 = vrot.slane %v2264_v31, 1  ;;  %v401_v44 = vrot.slane %v2264_v31, 2  ;;  %v387_v46 = vpack.c.bf16 %v375_v33, %v376_v34  ;;  %v359_v47 = vrot.slane %v2274_v35, 1  ;;  %859 = vmatpush1.bf16.msra.mxu0 %v1702_v40 }
  0x7f   : > { %567 = vrot.lane.b32.xlu0 %v386_v24, %s1940_s27  ;;  %v402_v48 = vrot.slane %v2274_v35, 2  ;;  %v2294_v49 = vunpack.c.l.bf16 %v2267_v32  ;;  %v442_v53 = vrot.slane %v2264_v31, 3  ;;  %v443_v54 = vrot.slane %v2274_v35, 3  ;;  %860 = vmatprep.subr.bf16.mxu0 %v1703_v45 }
  0x80   : > { %591 = vrot.lane.b32.xlu1 %v427_v29, %s1942_s30  ;;  %v428_v56 = vpack.c.bf16 %v416_v41, %v417_v37  ;;  %v469_v57 = vpack.c.bf16 %v457_v42, %v458_v38  ;;  %v360_v58 = vrot.slane %v2281_v39, 1  ;;  %v374_v60 = vsel %vm367_vm0, %v357_v19, %v358_v43  ;;  %v1708_v19 = vld [vmem:[#allocation5 + $0x10] ss:$8 sps:$4 sm:$0xff]  }
  0x81   : > { %v361_v59 = vrot.slane %v2294_v49, 1  ;;  %v415_v61 = vsel %vm408_vm2, %v400_v27, %v401_v44  ;;  %v403_v62 = vrot.slane %v2281_v39, 2  ;;  %v404_v0 = vrot.slane %v2294_v49, 2  ;;  %v1709_v27 = vld [vmem:[#allocation5 + $0x4] ss:$8 sps:$4 sm:$0xff]  }
  0x82   : > { %v373_v15 = vsel %vm367_vm0, %v358_v43, %v359_v47  ;;  %v444_v16 = vrot.slane %v2281_v39, 3  ;;  %v445_v21 = vrot.slane %v2294_v49, 3  ;;  %v2316_v22 = vunpack.c.h.bf16 %v2267_v32  ;;  %861 = vmatpush1.bf16.msra.mxu0 %v1705_v52  ;;  %v1711_v43 = vld [vmem:[#allocation5] ss:$8 sps:$4 sm:$0xff]  }
  0x83   : > { %615 = vrot.lane.b32.xlu0 %v468_v36, %s1941_s29  ;;  %v414_v23 = vsel %vm408_vm2, %v401_v44, %v402_v48  ;;  %v455_v24 = vsel %vm449_vm1, %v442_v53, %v443_v54  ;;  %v456_v25 = vsel %vm449_vm1, %v441_v30, %v442_v53  ;;  %v2325_v26 = vunpack.c.l.bf16 %v2297_v50  ;;  %862 = vmatprep.subr.bf16.mxu0 %v1706_v55 }
  0x84   : > { %569 = vrot.lane.b32.xlu1 %v387_v46, %s1940_s27  ;;  %v371_v28 = vsel %vm367_vm0, %v360_v58, %v361_v59  ;;  %v372_v29 = vsel %vm367_vm0, %v359_v47, %v360_v58  ;;  %v362_v33 = vrot.slane %v2316_v22, 1  ;;  %v388_v34 = vpack.c.bf16 %v373_v15, %v374_v60  ;;  %v1712_v58 = vld [vmem:[#allocation5 + $0x94] ss:$8 sps:$4 sm:$0xff]  }
  0x85   : > { %v363_v36 = vrot.slane %v2325_v26, 1  ;;  %v405_v30 = vrot.slane %v2316_v22, 2  ;;  %v406_v37 = vrot.slane %v2325_v26, 2  ;;  %v429_v38 = vpack.c.bf16 %v414_v23, %v415_v61 }
  0x86   : > { %v470_v40 = vpack.c.bf16 %v455_v24, %v456_v25  ;;  %v446_v41 = vrot.slane %v2316_v22, 3  ;;  %v447_v42 = vrot.slane %v2325_v26, 3  ;;  %v389_v44 = vpack.c.bf16 %v371_v28, %v372_v29  ;;  %863 = vmatpush1.bf16.msra.mxu0 %v1708_v19 }
  0x87   : > { %593 = vrot.lane.b32.xlu0 %v428_v56, %s1942_s30  ;;  %v412_v45 = vsel %vm408_vm2, %v403_v62, %v404_v0  ;;  %v413_v46 = vsel %vm408_vm2, %v402_v48, %v403_v62  ;;  %v453_v47 = vsel %vm449_vm1, %v444_v16, %v445_v21  ;;  %v454_v52 = vsel %vm449_vm1, %v443_v54, %v444_v16 }
  0x88   : > { %617 = vrot.lane.b32.xlu1 %v469_v57, %s1941_s29  ;;  %v2349_v53 = vsel %vm367_vm0, %v362_v33, %v363_v36  ;;  %v2353_v55 = vsel %vm367_vm0, %v361_v59, %v362_v33  ;;  %v2356_v56 = vunpack.c.h.bf16 %v2297_v50  ;;  %v2363_v48 = vsel %vm408_vm2, %v405_v30, %v406_v37  ;;  %864 = vmatprep.subr.bf16.mxu0 %v1709_v27 }
  0x89   : > { %v2367_v54 = vsel %vm408_vm2, %v404_v0, %v405_v30  ;;  %v2373_v57 = vsel %vm449_vm1, %v446_v41, %v447_v42  ;;  %vm490_vm3 = vcmp.lt.s32.totalorder %v2138_v1, 4  ;;  %v2379_v59 = vsel %vm449_vm1, %v445_v21, %v446_v41  ;;  %v1714_v21 = vld [vmem:[#allocation5 + $0x90] ss:$8 sps:$4 sm:$0xff]  }
  0x8a   : > { %v474_v60 = vrot.slane %v2153_v5, 4  ;;  %v475_v61 = vrot.slane %v2156_v6, 4  ;;  %v476_v62 = vrot.slane %v2159_v7, 4  ;;  %v430_v0 = vpack.c.bf16 %v412_v45, %v413_v46  ;;  %865 = vmatpush1.bf16.msra.mxu0 %v1711_v43  ;;  %v1716_v7 = vld [vmem:[#allocation5 + $0x84] ss:$8 sps:$4 sm:$0xff]  }
  0x8b   : > { %571 = vrot.lane.b32.xlu0 %v388_v34, %s1940_s27  ;;  %vm627_vm4 = vcmask 261120   ;;  %v471_v15 = vpack.c.bf16 %v453_v47, %v454_v52  ;;  %v390_v16 = vpack.c.bf16 %v2349_v53, %v2353_v55  ;;  %v431_v19 = vpack.c.bf16 %v2363_v48, %v2367_v54  ;;  %878 = vmatprep.subr.bf16.mxu0 %v1712_v58  ;;  %v1718_v43 = vld [vmem:[#allocation5 + $0x80] ss:$8 sps:$4 sm:$0xff]  }
  0x8c   : > { %595 = vrot.lane.b32.xlu1 %v429_v38, %s1942_s30  ;;  %v364_v23 = vrot.slane %v2356_v56, 1  ;;  %v472_v6 = vpack.c.bf16 %v2373_v57, %v2379_v59  ;;  %v504_v24 = vsel %vm490_vm3, %v475_v61, %v476_v62  ;;  %v505_v25 = vsel %vm490_vm3, %v474_v60, %v475_v61 }
  0x8d   : > { %v477_v27 = vrot.slane %v2162_v8, 4  ;;  %v407_v28 = vrot.slane %v2356_v56, 2  ;;  %v507_v29 = vpack.c.bf16 %v504_v24, %v505_v25  ;;  %v478_v33 = vrot.slane %v2168_v10, 4 }
  0x8e   : > { %v479_v34 = vrot.slane %v2171_v11, 4  ;;  %v448_v30 = vrot.slane %v2356_v56, 3  ;;  %v481_v41 = vrot.slane %v2177_v13, 4  ;;  %v368_v8 = vsel %vm367_vm0, %v363_v36, %v364_v23  ;;  %879 = vmatpush2.bf16.msra.mxu0 %v1714_v21 }
  0x8f   : > { %619 = vrot.lane.b32.xlu0 %v470_v40, %s1941_s29  ;;  %v2406_v38 = vsel %vm490_vm3, %v476_v62, %v477_v27  ;;  %v480_v40 = vrot.slane %v2174_v12, 4  ;;  %1549 = vmatprep.mubr.msk.bf16.mxu0 %vm627_vm4, %v507_v29  ;;  %v502_v10 = vsel %vm490_vm3, %v477_v27, %v478_v33  ;;  %v483_v45 = vrot.slane %v2264_v31, 4 }
  0x90   : > { %573 = vrot.lane.b32.xlu1 %v389_v44, %s1940_s27  ;;  %v2417_v11 = vsel %vm490_vm3, %v478_v33, %v479_v34  ;;  %v482_v44 = vrot.slane %v2242_v63, 4  ;;  %880 = vmatprep.subr.bf16.mxu0 %v1716_v7  ;;  %v508_v12 = vpack.c.bf16 %v502_v10, %v2406_v38  ;;  %v383_v63 = vsel %vm367_vm0, %v364_v23, %v349_v14 }
  0x91   : > { %v500_v13 = vsel %vm490_vm3, %v479_v34, %v480_v40  ;;  %v2426_v36 = vsel %vm490_vm3, %v480_v40, %v481_v41  ;;  %v484_v52 = vrot.slane %v2274_v35, 4  ;;  %v485_v55 = vrot.slane %v2281_v39, 4 }
  0x92   : > { %v509_v46 = vpack.c.bf16 %v500_v13, %v2417_v11  ;;  %v2437_v47 = vsel %vm490_vm3, %v481_v41, %v482_v44  ;;  %v2444_v31 = vsel %vm490_vm3, %v482_v44, %v483_v45  ;;  %v486_v48 = vrot.slane %v2294_v49, 4  ;;  %881 = vmatpush2.bf16.msra.mxu0 %v1718_v43 }
  0x93   : > { %597 = vrot.lane.b32.xlu0 %v430_v0, %s1942_s30  ;;  %v510_v53 = vpack.c.bf16 %v2437_v47, %v2426_v36  ;;  %v409_v14 = vsel %vm408_vm2, %v406_v37, %v407_v28  ;;  %v2454_v35 = vsel %vm490_vm3, %v483_v45, %v484_v52  ;;  %v487_v54 = vrot.slane %v2316_v22, 4 }
  0x94   : > { %621 = vrot.lane.b32.xlu1 %v471_v15, %s1941_s29  ;;  %v488_v57 = vrot.slane %v2325_v26, 4  ;;  %v424_v39 = vsel %vm408_vm2, %v407_v28, %v392_v20  ;;  %v511_v49 = vpack.c.bf16 %v2454_v35, %v2444_v31  ;;  %v2467_v37 = vsel %vm490_vm3, %v485_v55, %v486_v48 }
  0x95   : > { %v2471_v58 = vsel %vm490_vm3, %v484_v52, %v485_v55  ;;  %v391_v22 = vpack.c.bf16 %v383_v63, %v368_v8  ;;  %v2482_v61 = vsel %vm490_vm3, %v486_v48, %v487_v54  ;;  %v450_v62 = vsel %vm449_vm1, %v447_v42, %v448_v30 }
  0x96   : > { %v512_v59 = vpack.c.bf16 %v2467_v37, %v2471_v58  ;;  %v2478_v20 = vsel %vm490_vm3, %v487_v54, %v488_v57  ;;  %v465_v0 = vsel %vm449_vm1, %v448_v30, %v433_v17  ;;  %v489_v23 = vrot.slane %v2356_v56, 4  ;;  %v1726_v58 = vld [vmem:[#allocation8 + $0x78] sm:$0xff]  }
  0x97   : > { %575 = vrot.lane.b32.xlu0 %v390_v16, %s1940_s27  ;;  %v513_v15 = vpack.c.bf16 %v2478_v20, %v2482_v61  ;;  %v432_v16 = vpack.c.bf16 %v424_v39, %v409_v14  ;;  %vm652_vm5 = vcmask 523264   ;;  %vm669_vm6 = vcmask 785408   ;;  %1580 = vmatprep.subr.bf16.mxu1 %v1726_v58  ;;  %v1729_v20 = vld [vmem:[#allocation8 + $0x30] sm:$0xff]   ;;  %v1730_v61 = vld [vmem:[#allocation8 + $0x68] sm:$0xff]  }
  0x98   : > { %599 = vrot.lane.b32.xlu1 %v431_v19, %s1942_s30  ;;  %v473_v19 = vpack.c.bf16 %v465_v0, %v450_v62  ;;  %v2499_v26 = vsel %vm490_vm3, %v488_v57, %v489_v23  ;;  %v2505_v17 = vsel %vm490_vm3, %v489_v23, %v474_v60  ;;  %v1731_v62 = vld [vmem:[#allocation8 + $0x28] sm:$0xff]   ;;  %v1733_v0 = vld [vmem:[#allocation8 + $0x20] sm:$0xff]   ;;  %v1737_v23 = vld [vmem:[#allocation8 + $0x10] sm:$0xff]   ;;  %vm1230_vm7 = vcmask 1041409  }
  0x99   : > { %v514_v42 = vpack.c.bf16 %v2505_v17, %v2499_v26  ;;  %v1738_v26 = vld [vmem:[#allocation8 + $0x48] sm:$0xff]   ;;  %vm1232_vm8 = vcmask 1042434   ;;  %vm1234_vm9 = vcmask 1043459   ;;  %vm1236_vm10 = vcmask 1044484  }
  0x9a   : > { %v1739_v17 = vld [vmem:[#allocation8 + $0x8] sm:$0xff]   ;;  %vm1238_vm11 = vcmask 1045509   ;;  %vm1240_vm12 = vcmask 1046534   ;;  %vm1242_vm13 = vcmask 1047559  }
  0x9b   : > { %623 = vrot.lane.b32.xlu0 %v472_v6, %s1941_s29 }
  0x9c   : > { %577 = vrot.lane.b32.xlu1 %v391_v22, %s1940_s27  ;;  %v1727_v22 = vld [vmem:[#allocation8 + $0x38] sm:$0xff]   ;;  %s1393_s27 = scalar_lea.sflag [#allocation4], %s2120_s9 }
  0x9d   : > { %1581 = vmatpush3.bf16.msra.mxu1 %v1727_v22 }
  0x9f   : > { %601 = vrot.lane.b32.xlu0 %v432_v16, %s1942_s30  ;;  %v1735_v16 = vld [vmem:[#allocation8 + $0x18] sm:$0xff]   ;;  %s1860_s30 = sshll.u32 %s1943_s25, 4  ;;  %s1861_s30 = int_to_ptr.vmem [resolvable:$false] %s1860_s30 }
  0xa0   : > { %625 = vrot.lane.b32.xlu1 %v473_v19, %s1941_s29  ;;  %v1736_v19 = vld [vmem:[#allocation8 + $0x50] sm:$0xff]   ;;  %s1856_s29 = scalar_lea.vmem %s1407_s20, 128  ;;  %s1862_s11 = scalar_lea.vmem %s1861_s30, 256 }
  0xa1   : > { %p1857_p12 = scmp.ne.s32.totalorder %s1407_s20, %s1856_s29  ;;  %p1863_p1 = scmp.lt.s32.totalorder %s1407_s20, %s1861_s30 }
  0xa2   : > { %p1864_p3 = scmp.lt.s32.totalorder %s1862_s11, %s1856_s29 }
  0xa3   : > { %p1858_p5 = pnand %p1857_p12, %p2733_p0 }
  0xa4   : > { %p1865_p6 = por %p1864_p3, %p1863_p1 }
  0xa5   : > { %p1859_p10 = pneg %p1858_p5 }
  0xa7   : > { %p1866_p9 = pnand %p1865_p6, %p1859_p10 }
  0xe5   : > { %v564_v21 = vpop.permute.xlu0 %563 }
  0xe6   : > { %v612_v6 = vpop.permute.xlu1 %611  ;;  %v630_v56 = vsel %vm627_vm4, %v2141_v2, %v564_v21  ;;  %v1741_v21 = vld [vmem:[#allocation8] sm:$0xff]  }
  0xe9   : > { %v588_v7 = vpop.permute.xlu0 %587 }
  0xea   : > { %v654_v5 = vsel %vm652_vm5, %v630_v56, %v588_v7  ;;  %v566_v24 = vpop.permute.xlu1 %565  ;;  %v714_v56 = vld [vmem:[%s2707_s2] sm:$0x3]  ;;  %v722_v7 = vsub.s32 1, %v2138_v1 }
  0xeb   : > { %v671_v60 = vsel %vm669_vm6, %v654_v5, %v612_v6  ;;  %v633_v25 = vsel %vm627_vm4, %v2144_v3, %v566_v24  ;;  %v718_v6 = vsub.s32 0, %v2138_v1 }
  0xec   : > { %883 = vmatmul.mubr.bf16.vlgmr.msra.gmra.mxu0 %v671_v60  ;;  %v2560_v60 = vrot.slane %v714_v56, %v722_v7 }
  0xed   : > { %v590_v27 = vpop.permute.xlu0 %589  ;;  %1550 = vmatprep.mubr.msk.bf16.mxu0 %vm627_vm4, %v508_v12  ;;  %v2558_v5 = vrot.slane %v714_v56, %v718_v6 }
  0xee   : > { %v656_v28 = vsel %vm652_vm5, %v633_v25, %v590_v27  ;;  %v614_v29 = vpop.permute.xlu1 %613 }
  0xef   : > { %v674_v34 = vsel %vm669_vm6, %v656_v28, %v614_v29 }
  0xf1   : > { %v568_v33 = vpop.permute.xlu0 %567 }
  0xf2   : > { %v592_v2 = vpop.permute.xlu1 %591  ;;  %v636_v30 = vsel %vm627_vm4, %v2150_v4, %v568_v33 }
  0xf3   : > { %v658_v38 = vsel %vm652_vm5, %v636_v30, %v592_v2  ;;  %v2565_v2 = vld [vmem:[#allocation7 + $0x10] sm:$0xff] }
  0xf4   : > { %893 = vmatmul.mubr.bf16.gmra.mxu0 %v674_v34 }
  0xf5   : > { %1551 = vmatprep.mubr.msk.bf16.mxu0 %vm627_vm4, %v509_v46  ;;  %v616_v40 = vpop.permute.xlu0 %615 }
  0xf6   : > { %v570_v3 = vpop.permute.xlu1 %569  ;;  %v677_v41 = vsel %vm669_vm6, %v658_v38, %v616_v40  ;;  %v2567_v38 = vld [vmem:[#allocation7] sm:$0xff] }
  0xf7   : > { %v639_v43 = vsel %vm627_vm4, %v2165_v9, %v570_v3 }
  0xf9   : > { %v594_v8 = vpop.permute.xlu0 %593 }
  0xfa   : > { %v660_v10 = vsel %vm652_vm5, %v639_v43, %v594_v8  ;;  %v618_v11 = vpop.permute.xlu1 %617  ;;  %v2572_v43 = vld [vmem:[#allocation7 + $0x8] sm:$0xff] }
  0xfb   : > { %v680_v4 = vsel %vm669_vm6, %v660_v10, %v618_v11 }
  0xfc   : > { %903 = vmatmul.mubr.bf16.gmra.mxu0 %v677_v41  ;;  %v2570_v41 = vld [vmem:[#allocation7 + $0x18] sm:$0xff] }
  0xfd   : > { %1552 = vmatprep.mubr.msk.bf16.mxu0 %vm627_vm4, %v510_v53  ;;  %v572_v44 = vpop.permute.xlu0 %571 }
  0xfe   : > { %v596_v12 = vpop.permute.xlu1 %595  ;;  %v642_v13 = vsel %vm627_vm4, %v2227_v51, %v572_v44 }
  0xff   : > { %v662_v36 = vsel %vm652_vm5, %v642_v13, %v596_v12 }
 0x101   : > { %v620_v45 = vpop.permute.xlu0 %619 }
 0x102   : > { %v574_v63 = vpop.permute.xlu1 %573  ;;  %v683_v9 = vsel %vm669_vm6, %v662_v36, %v620_v45 }
 0x103   : > { %v645_v47 = vsel %vm627_vm4, %v2250_v18, %v574_v63 }
 0x104   : > { %913 = vmatmul.mubr.bf16.gmra.mxu0 %v680_v4 }
 0x105   : > { %1553 = vmatprep.mubr.msk.bf16.mxu0 %vm627_vm4, %v511_v49  ;;  %v598_v46 = vpop.permute.xlu0 %597 }
 0x106   : > { %v664_v52 = vsel %vm652_vm5, %v645_v47, %v598_v46  ;;  %v622_v53 = vpop.permute.xlu1 %621 }
 0x107   : > { %v686_v51 = vsel %vm669_vm6, %v664_v52, %v622_v53 }
 0x109   : > { %v576_v31 = vpop.permute.xlu0 %575 }
 0x10a   : > { %v600_v55 = vpop.permute.xlu1 %599  ;;  %v648_v48 = vsel %vm627_vm4, %v2267_v32, %v576_v31 }
 0x10b   : > { %v666_v18 = vsel %vm652_vm5, %v648_v48, %v600_v55 }
 0x10c   : > { %923 = vmatmul.mubr.bf16.gmra.mxu0 %v683_v9 }
 0x10d   : > { %1554 = vmatprep.mubr.msk.bf16.mxu0 %vm627_vm4, %v512_v59  ;;  %v624_v14 = vpop.permute.xlu0 %623  ;;  %v1728_v59 = vld [vmem:[#allocation8 + $0x70] sm:$0xff]  }
 0x10e   : > { %v578_v35 = vpop.permute.xlu1 %577  ;;  %v689_v54 = vsel %vm669_vm6, %v666_v18, %v624_v14  ;;  %1582 = vmatprep.subr.bf16.mxu1 %v1728_v59 }
 0x10f   : > { %v651_v57 = vsel %vm627_vm4, %v2297_v50, %v578_v35  ;;  %1583 = vmatpush3.bf16.msra.mxu1 %v1729_v20  ;;  %v1732_v50 = vld [vmem:[#allocation8 + $0x60] sm:$0xff]  }
 0x110   : > { %1584 = vmatprep.subr.bf16.mxu1 %v1730_v61 }
 0x111   : > { %v602_v39 = vpop.permute.xlu0 %601 }
 0x112   : > { %v668_v32 = vsel %vm652_vm5, %v651_v57, %v602_v39  ;;  %v626_v49 = vpop.permute.xlu1 %625 }
 0x113   : > { %v692_v37 = vsel %vm669_vm6, %v668_v32, %v626_v49  ;;  %1585 = vmatpush3.bf16.msra.mxu1 %v1731_v62 }
 0x114   : > { %933 = vmatmul.mubr.bf16.gmra.mxu0 %v686_v51  ;;  %1586 = vmatprep.subr.bf16.mxu1 %v1732_v50 }
 0x115   : > { %1555 = vmatprep.mubr.msk.bf16.mxu0 %vm627_vm4, %v513_v15  ;;  %v1734_v15 = vld [vmem:[#allocation8 + $0x58] sm:$0xff]  }
 0x117   : > { %1587 = vmatpush3.bf16.msra.mxu1 %v1733_v0 }
 0x118   : > { %1588 = vmatprep.subr.bf16.mxu1 %v1734_v15 }
 0x11b   : > { %1589 = vmatpush3.bf16.msra.mxu1 %v1735_v16 }
 0x11c   : > { %943 = vmatmul.mubr.bf16.gmra.mxu0 %v689_v54  ;;  %1590 = vmatprep.subr.bf16.mxu1 %v1736_v19 }
 0x11d   : > { %1556 = vmatprep.mubr.msk.bf16.mxu0 %vm627_vm4, %v514_v42  ;;  %v1740_v42 = vld [vmem:[#allocation8 + $0x40] sm:$0xff]  }
 0x11f   : > { %1591 = vmatpush3.bf16.msra.mxu1 %v1737_v23 }
 0x120   : > { %1592 = vmatprep.subr.bf16.mxu1 %v1738_v26 }
 0x123   : > { %1593 = vmatpush3.bf16.msra.mxu1 %v1739_v17 }
 0x124   : > { %953 = vmatmul.mubr.bf16.gmra.mxu0 %v692_v37  ;;  %1594 = vmatprep.subr.bf16.mxu1 %v1740_v42 }
 0x127   : > { %1595 = vmatpush3.bf16.msra.mxu1 %v1741_v21 }
 0x1ac   : > { %v884_v24 = vpop.f32.mrf.mxu0 }
 0x1ad   : > { %v885_v25 = vadd.f32 %v884_v24, %v2558_v5 }
 0x1ae   : > { %v886_v27 = vpop.f32.mrf.mxu0 }
 0x1af   : > { %v887_v28 = vadd.f32 %v886_v27, %v2560_v60  ;;  %v963_v34 = vmax.f32 %v885_v25, 0.0 }
 0x1b0   : > { %v888_v29 = vpop.f32.mrf.mxu0 }
 0x1b1   : > { %v889_v33 = vadd.f32 %v888_v29, %v2558_v5  ;;  %v964_v3 = vmax.f32 %v887_v28, 0.0  ;;  %v999_v44 = vmul.f32 %v2567_v38, %v963_v34 }
 0x1b2   : > { %v890_v30 = vpop.f32.mrf.mxu0 }
 0x1b3   : > { %v965_v1 = vmax.f32 %v889_v33, 0.0  ;;  %v891_v40 = vadd.f32 %v890_v30, %v2560_v60  ;;  %v1000_v13 = vmul.f32 %v2572_v43, %v964_v3 }
 0x1b4   : > { %v894_v8 = vpop.f32.mrf.mxu0 }
 0x1b5   : > { %v1001_v10 = vmul.f32 %v2565_v2, %v965_v1  ;;  %v966_v11 = vmax.f32 %v891_v40, 0.0  ;;  %v895_v53 = vadd.f32 %v894_v8, %v2558_v5 }
 0x1b6   : > { %v896_v4 = vpop.f32.mrf.mxu0 }
 0x1b7   : > { %v1002_v12 = vmul.f32 %v2570_v41, %v966_v11  ;;  %v1031_v36 = vmax.f32 %v999_v44, %v1001_v10  ;;  %v897_v14 = vadd.f32 %v896_v4, %v2560_v60  ;;  %v967_v54 = vmax.f32 %v895_v53, 0.0 }
 0x1b8   : > { %v898_v45 = vpop.f32.mrf.mxu0 }
 0x1b9   : > { %v1038_v63 = vmax.f32 %v1000_v13, %v1002_v12  ;;  %v899_v46 = vadd.f32 %v898_v45, %v2558_v5  ;;  %v1032_v47 = vrot.slane %v1031_v36, 4  ;;  %v968_v58 = vmax.f32 %v897_v14, 0.0 }
 0x1ba   : > { %v900_v9 = vpop.f32.mrf.mxu0  ;;  %v1003_v59 = vmul.f32 %v2567_v38, %v967_v54 }
 0x1bb   : > { %v1039_v31 = vrot.slane %v1038_v63, 4  ;;  %v901_v51 = vadd.f32 %v900_v9, %v2560_v60  ;;  %v969_v48 = vmax.f32 %v899_v46, 0.0  ;;  %v1033_v18 = vmax.f32 %v1031_v36, %v1032_v47 }
 0x1bc   : > { %v904_v52 = vpop.f32.mrf.mxu0  ;;  %v1004_v15 = vmul.f32 %v2572_v43, %v968_v58 }
 0x1bd   : > { %v1040_v57 = vmax.f32 %v1038_v63, %v1039_v31  ;;  %v970_v39 = vmax.f32 %v901_v51, 0.0  ;;  %v1005_v49 = vmul.f32 %v2565_v2, %v969_v48  ;;  %v1034_v37 = vrot.slane %v1033_v18, 2 }
 0x1be   : > { %v906_v55 = vpop.f32.mrf.mxu0  ;;  %v905_v16 = vadd.f32 %v904_v52, %v2558_v5 }
 0x1bf   : > { %v1041_v20 = vrot.slane %v1040_v57, 2  ;;  %v1006_v61 = vmul.f32 %v2570_v41, %v970_v39  ;;  %v1045_v50 = vmax.f32 %v1003_v59, %v1005_v49  ;;  %v1035_v0 = vmax.f32 %v1033_v18, %v1034_v37 }
 0x1c0   : > { %v908_v35 = vpop.f32.mrf.mxu0  ;;  %v907_v23 = vadd.f32 %v906_v55, %v2560_v60  ;;  %v971_v56 = vmax.f32 %v905_v16, 0.0 }
 0x1c1   : > { %v1042_v26 = vmax.f32 %v1040_v57, %v1041_v20  ;;  %v1052_v17 = vmax.f32 %v1004_v15, %v1006_v61  ;;  %v1046_v21 = vrot.slane %v1045_v50, 4  ;;  %v1036_v6 = vrot.slane %v1035_v0, 1 }
 0x1c2   : > { %v910_v32 = vpop.f32.mrf.mxu0  ;;  %v909_v7 = vadd.f32 %v908_v35, %v2558_v5  ;;  %v972_v25 = vmax.f32 %v907_v23, 0.0  ;;  %v1007_v10 = vmul.f32 %v2567_v38, %v971_v56 }
 0x1c3   : > { %v911_v27 = vadd.f32 %v910_v32, %v2560_v60  ;;  %v1043_v33 = vrot.slane %v1042_v26, 1  ;;  %v1053_v34 = vrot.slane %v1052_v17, 4  ;;  %v1047_v1 = vmax.f32 %v1045_v50, %v1046_v21 }
 0x1c4   : > { %v914_v22 = vpop.f32.mrf.mxu0  ;;  %v1037_v8 = vmax.f32 %v1035_v0, %v1036_v6  ;;  %v973_v11 = vmax.f32 %v909_v7, 0.0  ;;  %v1008_v12 = vmul.f32 %v2572_v43, %v972_v25 }
 0x1c5   : > { %v915_v40 = vadd.f32 %v914_v22, %v2558_v5  ;;  %v974_v13 = vmax.f32 %v911_v27, 0.0  ;;  %v1044_v63 = vmax.f32 %v1042_v26, %v1043_v33  ;;  %v1054_v9 = vmax.f32 %v1052_v17, %v1053_v34 }
 0x1c6   : > { %v916_v62 = vpop.f32.mrf.mxu0  ;;  %v1048_v53 = vrot.slane %v1047_v1, 2  ;;  %v1143_v48 = vpack.c.bf16 %v1037_v8, %v1037_v8  ;;  %v1009_v18 = vmul.f32 %v2565_v2, %v973_v11 }
 0x1c7   : > { %v917_v3 = vadd.f32 %v916_v62, %v2560_v60  ;;  %v975_v31 = vmax.f32 %v915_v40, 0.0  ;;  %v1010_v57 = vmul.f32 %v2570_v41, %v974_v13  ;;  %v1144_v37 = vpack.c.bf16 %v1044_v63, %v1044_v63 }
 0x1c8   : > { %v918_v19 = vpop.f32.mrf.mxu0  ;;  %v1049_v61 = vmax.f32 %v1047_v1, %v1048_v53  ;;  %v1055_v62 = vrot.slane %v1054_v9, 2  ;;  %v1059_v15 = vmax.f32 %v1007_v10, %v1009_v18  ;;  %v2611_v17 = vunpack.c.l.b16 %v1143_v48 }
 0x1c9   : > { %v919_v28 = vadd.f32 %v918_v19, %v2558_v5  ;;  %v976_v51 = vmax.f32 %v917_v3, 0.0  ;;  %v1011_v50 = vmul.f32 %v2567_v38, %v975_v31 }
 0x1ca   : > { %v920_v42 = vpop.f32.mrf.mxu0  ;;  %v1060_v1 = vrot.slane %v1059_v15, 4 }
 0x1cb   : > { %v921_v29 = vadd.f32 %v920_v42, %v2560_v60  ;;  %v977_v36 = vmax.f32 %v919_v28, 0.0  ;;  %v1012_v0 = vmul.f32 %v2572_v43, %v976_v51  ;;  %v1066_v42 = vmax.f32 %v1008_v12, %v1010_v57 }
 0x1cc   : > { %v924_v24 = vpop.f32.mrf.mxu0  ;;  %v1050_v28 = vrot.slane %v1049_v61, 1  ;;  %v1061_v53 = vmax.f32 %v1059_v15, %v1060_v1 }
 0x1cd   : > { %v925_v44 = vadd.f32 %v924_v24, %v2558_v5  ;;  %v978_v45 = vmax.f32 %v921_v29, 0.0  ;;  %v1013_v39 = vmul.f32 %v2565_v2, %v977_v36  ;;  %v1056_v29 = vmax.f32 %v1054_v9, %v1055_v62 }
 0x1ce   : > { %v926_v30 = vpop.f32.mrf.mxu0  ;;  %v1067_v10 = vrot.slane %v1066_v42, 4  ;;  %v2621_v9 = vmax.f32 %v1049_v61, %v1050_v28  ;;  %v1062_v62 = vrot.slane %v1061_v53, 2 }
 0x1cf   : > { %v927_v46 = vadd.f32 %v926_v30, %v2560_v60  ;;  %v979_v14 = vmax.f32 %v925_v44, 0.0  ;;  %v1014_v32 = vmul.f32 %v2570_v41, %v978_v45  ;;  %v1073_v21 = vmax.f32 %v1011_v50, %v1013_v39 }
 0x1d0   : > { %v928_v4 = vpop.f32.mrf.mxu0  ;;  %v2616_v30 = vunpack.c.l.b16 %v1144_v37  ;;  %v1068_v18 = vmax.f32 %v1066_v42, %v1067_v10 }
 0x1d1   : > { %v929_v47 = vadd.f32 %v928_v4, %v2558_v5  ;;  %v980_v58 = vmax.f32 %v927_v46, 0.0  ;;  %v1015_v16 = vmul.f32 %v2567_v38, %v979_v14  ;;  %v1080_v6 = vmax.f32 %v1012_v0, %v1014_v32 }
 0x1d2   : > { %v930_v52 = vpop.f32.mrf.mxu0  ;;  %v1074_v11 = vrot.slane %v1073_v21, 4  ;;  %v1057_v46 = vrot.slane %v1056_v29, 1 }
 0x1d3   : > { %v931_v55 = vadd.f32 %v930_v52, %v2560_v60  ;;  %v981_v35 = vmax.f32 %v929_v47, 0.0  ;;  %v1016_v56 = vmul.f32 %v2572_v43, %v980_v58  ;;  %v1081_v44 = vrot.slane %v1080_v6, 4 }
 0x1d4   : > { %v934_v54 = vpop.f32.mrf.mxu0  ;;  %v1075_v57 = vmax.f32 %v1073_v21, %v1074_v11  ;;  %v2628_v61 = vmax.f32 %v1056_v29, %v1057_v46  ;;  %v1063_v29 = vmax.f32 %v1061_v53, %v1062_v62 }
 0x1d5   : > { %v982_v49 = vmax.f32 %v931_v55, 0.0  ;;  %v1017_v22 = vmul.f32 %v2565_v2, %v981_v35  ;;  %v935_v59 = vadd.f32 %v934_v54, %v2558_v5  ;;  %v1082_v39 = vmax.f32 %v1080_v6, %v1081_v44 }
 0x1d6   : > { %v936_v20 = vpop.f32.mrf.mxu0  ;;  %v1076_v42 = vrot.slane %v1075_v57, 2 }
 0x1d7   : > { %v1018_v19 = vmul.f32 %v2570_v41, %v982_v49  ;;  %v937_v23 = vadd.f32 %v936_v20, %v2560_v60  ;;  %v1087_v7 = vmax.f32 %v1015_v16, %v1017_v22  ;;  %v983_v24 = vmax.f32 %v935_v59, 0.0 }
 0x1d8   : > { %v938_v26 = vpop.f32.mrf.mxu0  ;;  %v1069_v16 = vrot.slane %v1068_v18, 2  ;;  %v1083_v21 = vrot.slane %v1082_v39, 2 }
 0x1d9   : > { %v939_v25 = vadd.f32 %v938_v26, %v2558_v5  ;;  %v984_v33 = vmax.f32 %v937_v23, 0.0  ;;  %v1094_v40 = vmax.f32 %v1016_v56, %v1018_v19  ;;  %v1088_v12 = vrot.slane %v1087_v7, 4 }
 0x1da   : > { %v940_v27 = vpop.f32.mrf.mxu0  ;;  %v1019_v13 = vmul.f32 %v2567_v38, %v983_v24  ;;  %v1070_v44 = vmax.f32 %v1068_v18, %v1069_v16  ;;  %v1064_v18 = vrot.slane %v1063_v29, 1 }
 0x1db   : > { %v941_v34 = vadd.f32 %v940_v27, %v2560_v60  ;;  %v985_v3 = vmax.f32 %v939_v25, 0.0  ;;  %v1020_v47 = vmul.f32 %v2572_v43, %v984_v33  ;;  %v1095_v31 = vrot.slane %v1094_v40, 4 }
 0x1dc   : > { %v944_v8 = vpop.f32.mrf.mxu0  ;;  %v1089_v32 = vmax.f32 %v1087_v7, %v1088_v12  ;;  %v1084_v12 = vmax.f32 %v1082_v39, %v1083_v21  ;;  %v1146_v21 = vpack.c.bf16 %v2628_v61, %v2628_v61 }
 0x1dd   : > { %v986_v4 = vmax.f32 %v941_v34, 0.0  ;;  %v1021_v36 = vmul.f32 %v2565_v2, %v985_v3  ;;  %v945_v45 = vadd.f32 %v944_v8, %v2558_v5  ;;  %v1096_v50 = vmax.f32 %v1094_v40, %v1095_v31 }
 0x1de   : > { %v946_v63 = vpop.f32.mrf.mxu0  ;;  %v1090_v24 = vrot.slane %v1089_v32, 2 }
 0x1df   : > { %v1022_v52 = vmul.f32 %v2570_v41, %v986_v4  ;;  %v1101_v51 = vmax.f32 %v1019_v13, %v1021_v36  ;;  %v947_v55 = vadd.f32 %v946_v63, %v2560_v60  ;;  %v987_v35 = vmax.f32 %v945_v45, 0.0 }
 0x1e0   : > { %v948_v48 = vpop.f32.mrf.mxu0  ;;  %v1097_v33 = vrot.slane %v1096_v50, 2  ;;  %v1077_v4 = vmax.f32 %v1075_v57, %v1076_v42  ;;  %v1091_v45 = vmax.f32 %v1089_v32, %v1090_v24 }
 0x1e1   : > { %v1108_v14 = vmax.f32 %v1020_v47, %v1022_v52  ;;  %v949_v54 = vadd.f32 %v948_v48, %v2558_v5  ;;  %v1102_v49 = vrot.slane %v1101_v51, 4  ;;  %v988_v22 = vmax.f32 %v947_v55, 0.0 }
 0x1e2   : > { %v950_v37 = vpop.f32.mrf.mxu0  ;;  %v1023_v19 = vmul.f32 %v2567_v38, %v987_v35  ;;  %v1098_v52 = vmax.f32 %v1096_v50, %v1097_v33  ;;  %v1071_v35 = vrot.slane %v1070_v44, 1  ;;  %v1078_v39 = vrot.slane %v1077_v4, 1 }
 0x1e3   : > { %v1109_v58 = vrot.slane %v1108_v14, 4  ;;  %v989_v59 = vmax.f32 %v949_v54, 0.0  ;;  %v951_v20 = vadd.f32 %v950_v37, %v2560_v60  ;;  %v1103_v0 = vmax.f32 %v1101_v51, %v1102_v49 }
 0x1e4   : > { %v954_v15 = vpop.f32.mrf.mxu0  ;;  %v1024_v25 = vmul.f32 %v2572_v43, %v988_v22  ;;  %v1092_v22 = vrot.slane %v1091_v45, 1 }
 0x1e5   : > { %v1025_v23 = vmul.f32 %v2565_v2, %v989_v59  ;;  %v990_v26 = vmax.f32 %v951_v20, 0.0  ;;  %v1110_v6 = vmax.f32 %v1108_v14, %v1109_v58  ;;  %v955_v56 = vadd.f32 %v954_v15, %v2558_v5 }
 0x1e6   : > { %v956_v7 = vpop.f32.mrf.mxu0  ;;  %v1104_v34 = vrot.slane %v1103_v0, 2  ;;  %v1085_v58 = vrot.slane %v1084_v12, 1  ;;  %v1099_v20 = vrot.slane %v1098_v52, 1 }
 0x1e7   : > { %v1115_v27 = vmax.f32 %v1023_v19, %v1025_v23  ;;  %v1026_v28 = vmul.f32 %v2570_v41, %v990_v26  ;;  %v957_v1 = vadd.f32 %v956_v7, %v2560_v60  ;;  %v991_v10 = vmax.f32 %v955_v56, 0.0 }
 0x1e8   : > { %v958_v40 = vpop.f32.mrf.mxu0  ;;  %v1111_v13 = vrot.slane %v1110_v6, 2  ;;  %v1105_v53 = vmax.f32 %v1103_v0, %v1104_v34  ;;  %v1065_v0 = vmax.f32 %v1063_v29, %v1064_v18  ;;  %v1072_v19 = vmax.f32 %v1070_v44, %v1071_v35 }
 0x1e9   : > { %v1116_v3 = vrot.slane %v1115_v27, 4  ;;  %v1122_v8 = vmax.f32 %v1024_v25, %v1026_v28  ;;  %v959_v11 = vadd.f32 %v958_v40, %v2558_v5  ;;  %v992_v31 = vmax.f32 %v957_v1, 0.0 }
 0x1ea   : > { %v960_v36 = vpop.f32.mrf.mxu0  ;;  %v1027_v14 = vmul.f32 %v2567_v38, %v991_v10  ;;  %v1112_v54 = vmax.f32 %v1110_v6, %v1111_v13  ;;  %v1106_v62 = vrot.slane %v1105_v53, 1  ;;  %v1079_v23 = vmax.f32 %v1077_v4, %v1078_v39 }
 0x1eb   : > { %v1117_v63 = vmax.f32 %v1115_v27, %v1116_v3  ;;  %v1123_v46 = vrot.slane %v1122_v8, 4  ;;  %v993_v47 = vmax.f32 %v959_v11, 0.0  ;;  %v961_v51 = vadd.f32 %v960_v36, %v2560_v60 }
 0x1ec   : > { %v1028_v59 = vmul.f32 %v2572_v43, %v992_v31  ;;  %v1086_v43 = vmax.f32 %v1084_v12, %v1085_v58  ;;  %v1093_v6 = vmax.f32 %v1091_v45, %v1092_v22  ;;  %v1145_v56 = vpack.c.bf16 %v2621_v9, %v2621_v9 }
 0x1ed   : > { %v1118_v55 = vrot.slane %v1117_v63, 2  ;;  %v1124_v48 = vmax.f32 %v1122_v8, %v1123_v46  ;;  %v1029_v5 = vmul.f32 %v2565_v2, %v993_v47  ;;  %v994_v57 = vmax.f32 %v961_v51, 0.0 }
 0x1ee   : > { %v1113_v2 = vrot.slane %v1112_v54, 1  ;;  %v1100_v7 = vmax.f32 %v1098_v52, %v1099_v20  ;;  %v1107_v24 = vmax.f32 %v1105_v53, %v1106_v62  ;;  %v1147_v27 = vpack.c.bf16 %v1065_v0, %v1065_v0 }
 0x1ef   : > { %v1119_v32 = vmax.f32 %v1117_v63, %v1118_v55  ;;  %v1125_v49 = vrot.slane %v1124_v48, 2  ;;  %v1129_v37 = vmax.f32 %v1027_v14, %v1029_v5  ;;  %v1030_v60 = vmul.f32 %v2570_v41, %v994_v57 }
 0x1f0   : > { %v1114_v33 = vmax.f32 %v1112_v54, %v1113_v2  ;;  %v1148_v34 = vpack.c.bf16 %v1072_v19, %v1072_v19  ;;  %v1149_v1 = vpack.c.bf16 %v1079_v23, %v1079_v23  ;;  %v1217_v3 = vunpack.c.l.b16 %v1146_v21 }
 0x1f1   : > { %v1126_v50 = vmax.f32 %v1124_v48, %v1125_v49  ;;  %v1130_v38 = vrot.slane %v1129_v37, 4  ;;  %v1120_v15 = vrot.slane %v1119_v32, 1  ;;  %v1136_v16 = vmax.f32 %v1028_v59, %v1030_v60 }
 0x1f2   : > { %v1150_v8 = vpack.c.bf16 %v1086_v43, %v1086_v43  ;;  %v1151_v10 = vpack.c.bf16 %v1093_v6, %v1093_v6  ;;  %v1216_v44 = vunpack.c.l.b16 %v1145_v56  ;;  %v1152_v9 = vpack.c.bf16 %v1100_v7, %v1100_v7 }
 0x1f3   : > { %v1131_v26 = vmax.f32 %v1129_v37, %v1130_v38  ;;  %v1127_v42 = vrot.slane %v1126_v50, 1  ;;  %v1137_v41 = vrot.slane %v1136_v16, 4  ;;  %v1121_v28 = vmax.f32 %v1119_v32, %v1120_v15 }
 0x1f4   : > { %v1153_v4 = vpack.c.bf16 %v1107_v24, %v1107_v24  ;;  %v1218_v13 = vunpack.c.l.b16 %v1147_v27  ;;  %v1154_v45 = vpack.c.bf16 %v1114_v33, %v1114_v33  ;;  %v1219_v46 = vunpack.c.l.b16 %v1148_v34 }
 0x1f5   : > { %v1132_v25 = vrot.slane %v1131_v26, 2  ;;  %v1138_v29 = vmax.f32 %v1136_v16, %v1137_v41  ;;  %v1128_v61 = vmax.f32 %v1126_v50, %v1127_v42  ;;  %v1155_v63 = vpack.c.bf16 %v1121_v28, %v1121_v28 }
 0x1f6   : > { %v1220_v47 = vunpack.c.l.b16 %v1149_v1  ;;  %v1221_v31 = vunpack.c.l.b16 %v1150_v8  ;;  %v1222_v51 = vunpack.c.l.b16 %v1151_v10  ;;  %v1244_v48 = vsel %vm1230_vm7, %v1217_v3, %v2616_v30 }
 0x1f7   : > { %v1133_v40 = vmax.f32 %v1131_v26, %v1132_v25  ;;  %v1139_v11 = vrot.slane %v1138_v29, 2  ;;  %v1156_v52 = vpack.c.bf16 %v1128_v61, %v1128_v61  ;;  %v1224_v14 = vunpack.c.l.b16 %v1153_v4  ;;  %v1557_v26 = vld [vmem:[%s2710_s5] ss:$0 sm:$0xff] }
 0x1f8   : > { %v1223_v5 = vunpack.c.l.b16 %v1152_v9  ;;  %v1231_v35 = vsel %vm1230_vm7, %v1216_v44, %v2611_v17  ;;  %v1225_v57 = vunpack.c.l.b16 %v1154_v45  ;;  %v1226_v39 = vunpack.c.l.b16 %v1155_v63 }
 0x1f9   : > { %v1134_v12 = vrot.slane %v1133_v40, 1  ;;  %v1140_v36 = vmax.f32 %v1138_v29, %v1139_v11  ;;  %v1233_v32 = vsel %vm1232_vm8, %v1218_v13, %v1231_v35  ;;  %v1227_v49 = vunpack.c.l.b16 %v1156_v52 }
 0x1fa   : > { %v1245_v37 = vsel %vm1232_vm8, %v1219_v46, %v1244_v48  ;;  %v1235_v22 = vsel %vm1234_vm9, %v1220_v47, %v1233_v32 }
 0x1fb   : > { %v1135_v53 = vmax.f32 %v1133_v40, %v1134_v12  ;;  %v1141_v55 = vrot.slane %v1140_v36, 1  ;;  %v1246_v30 = vsel %vm1234_vm9, %v1221_v31, %v1245_v37  ;;  %v1237_v60 = vsel %vm1236_vm10, %v1222_v51, %v1235_v22 }
 0x1fc   : > { %v1247_v17 = vsel %vm1236_vm10, %v1223_v5, %v1246_v30  ;;  %v1239_v20 = vsel %vm1238_vm11, %v1224_v14, %v1237_v60 }
 0x1fd   : > { %v1157_v18 = vpack.c.bf16 %v1135_v53, %v1135_v53  ;;  %v1142_v54 = vmax.f32 %v1140_v36, %v1141_v55  ;;  %v1248_v50 = vsel %vm1238_vm11, %v1225_v57, %v1247_v17  ;;  %v1241_v38 = vsel %vm1240_vm12, %v1226_v39, %v1239_v20 }
 0x1fe   : > { %v1249_v0 = vsel %vm1240_vm12, %v1227_v49, %v1248_v50 }
 0x1ff   : > { %v1228_v58 = vunpack.c.l.b16 %v1157_v18  ;;  %v1158_v59 = vpack.c.bf16 %v1142_v54, %v1142_v54 }
 0x201   : > { %v1229_v62 = vunpack.c.l.b16 %v1158_v59  ;;  %v1243_v2 = vsel %vm1242_vm13, %v1228_v58, %v1241_v38 }
 0x202   : > { %v1251_v19 = vpack.c.b16 %v1243_v2, %v1243_v2 }
 0x203   : > { %v1250_v15 = vsel %vm1242_vm13, %v1229_v62, %v1249_v0 }
 0x204   : > { %v1252_v16 = vpack.c.b16 %v1250_v15, %v1250_v15 }
 0x206   : > { %1383 = vmatprep.mubr.bf16.mxu1 %v1252_v16 }
 0x207   : > { %1384 = vmatmul.mubr.bf16.vlgmr.msra.gmra.mxu1 %v1251_v19 }
 0x2c7   : > { %v1596_v23 = vpop.f32.mrf.mxu1 }
 0x2c9   : > { %v1597_v42 = vpop.f32.mrf.mxu1 }
 0x2ca   : > { %v1598_v21 = vadd.f32 %v1597_v42, %v1596_v23 }
 0x2cb   : > { %v1599_v43 = vpop.f32.mrf.mxu1 }
 0x2cc   : > { %v1386_v6 = vadd.f32 %v1598_v21, %v1557_v26 }
 0x2cd   : > { %v1600_v41 = vpop.f32.mrf.mxu1 }
 0x2ce   : > { %1391 = vst [vmem:[%s314_s15] sm:$0xff] %v1386_v6 }
 0x2cf   : > { %1869 = shalt.err (!%p1866_p9)
}
 0x2d0   : > { %s1870_s12 = scalar_lea.hbm %s2668_s26, 128  ;;  %s1874_s7 = scalar_lea.hbm %s2711_s6, 256 }
 0x2d1   : > { %p1871_p7 = scmp.ne.s32.totalorder %s2668_s26, %s1870_s12  ;;  %p1875_p2 = scmp.lt.s32.totalorder %s2668_s26, %s2711_s6 }
 0x2d2   : > { %p1876_p11 = scmp.lt.s32.totalorder %s1874_s7, %s1870_s12 }
 0x2d3   : > { %p1872_p4 = pnand %p1871_p7, %p2733_p0 }
 0x2d4   : > { %p1877_p13 = por %p1876_p11, %p1875_p2 }
 0x2d5   : > { %p1873_p8 = pneg %p1872_p4 }
 0x2d7   : > { %p1878_p12 = pnand %p1877_p13, %p1873_p8 }
 0x2d9   : > { %1881 = shalt.err (!%p1878_p12)
}
 0x2da   : > { %1616 = dma.vmem_to_hbm [thread:$0]  (%p2733_p0), %s1407_s20, 128, %s2668_s26, %s1393_s27  }
 0x2db PF: > { %s1418_s15 = sand.u32 1, %s1916_s21   ;;  %p2734_p5 = scmp.ne.s32.totalorder %s2719_s28, 0 }
 0x2dc   : > { %p2735_p10 = scmp.ge.s32.totalorder %s1928_s24, 2  ;;  %s1419_s10 = scalar_lea.sflag [#allocation4], %s1418_s15 }
 0x2de   : > { %p1633_p1 = pnand %p2735_p10, %p2734_p5 }
 0x2e0   : > { %p1634_p3 = pneg %p1633_p1 }
 0x2e2   : > { %1911 = dma.done.wait (%p1634_p3), %s1419_s10, 128  }
 0x2e3   : > { %1913 = vsyncadd (%p1634_p3), %s1419_s10, 4294967168  ;;  %p21_p6 = scmp.ge.s32.totalorder %s2062_s13, 4   ;;  %s2736_s21 = smov %s1920_s22 }
 0x2e4   : > { %s2737_s22 = smov %s1924_s23  ;;  %s2738_s23 = smov %s2072_s16 }
 0x2e5   : > { %s2739_s24 = smov %s2062_s13  ;;  %23 = sbr.rel (!%p21_p6) target bundleno = 7 (0x7), region = 101 }
 0x2ea   :  { %1424 = vsyncpa [#allocation3], 1 }
 0x2eb   :  { %1426 = vsyncpa [#allocation3 + $0x1], 1 }
 0x2ec   :  { %1427 = vsyncpa [#allocation6], 1 }
 0x2ed   :  { %1428 = vsyncpa [#allocation9], 1 }
 0x2ee   :  { %1429 = vsyncpa [#allocation4], 1 }
 0x2ef   :  { %1431 = vsyncpa [#allocation4 + $0x1], 1 }

</bundles_post_ra>
